<compile_context>
chip_gen: v6e
topology: v6e:2x2x1
jax: 0.10.0
libtpu: 0.0.40
codegen_flags: <defaults>
</compile_context>

<pallas_src>
import functools

import jax
import jax.numpy as jnp
from jax.experimental import pallas as pl
from jax.experimental.pallas import tpu as pltpu


def _round_up(x: int, m: int) -> int:
    return (x + m - 1) // m * m


@functools.lru_cache(maxsize=1)
def _vmem_limit_bytes() -> int:
    """Scoped-VMEM limit to request from Mosaic, derived from the chip if possible."""
    cap = None
    try:
        info = pltpu.get_tpu_info()
        cap = int(getattr(info, "vmem_capacity_bytes", 0)) or None
    except Exception:
        cap = None
    if cap is None:
        cap = 64 * 1024 * 1024  # v7x per-TensorCore physical VMEM (smallest gen)
    # Never request more than half the physical VMEM, and never above 64 MiB.
    return min(cap // 2, 64 * 1024 * 1024)


# ----------------------------- Pallas kernel ---------------------------------
def _patchify_matmul_kernel(x_ref, w_ref, o_ref):
    # x_ref: (tm, Kp) patch rows; w_ref: (Kp, N) weight; o_ref: (tm, N).
    o_ref[...] = jnp.dot(
        x_ref[...], w_ref[...], preferred_element_type=jnp.float32
    ).astype(o_ref.dtype)


def _patch_matmul(patches, w_mat, *, tm, out_dtype, vmem_limit_bytes):
    """patches: (M, Kp), w_mat: (Kp, N) -> (M, N) via a row-tiled MXU matmul."""
    M, Kp = patches.shape
    Kw, N = w_mat.shape
    assert Kp == Kw, (Kp, Kw)
    assert M % tm == 0, (M, tm)

    bytes_accessed = (
        M * Kp * patches.dtype.itemsize
        + Kw * N * w_mat.dtype.itemsize
        + M * N * jnp.dtype(out_dtype).itemsize
    )
    return pl.pallas_call(
        _patchify_matmul_kernel,
        out_shape=jax.ShapeDtypeStruct((M, N), out_dtype),
        grid_spec=pltpu.PrefetchScalarGridSpec(
            num_scalar_prefetch=0,
            grid=(M // tm,),
            in_specs=[
                # Streamed operand: large lane-dense (tm, 128) tiles.
                pl.BlockSpec((tm, Kp), lambda i: (i, 0)),
                # Weight: constant block index -> fetched once, stays resident.
                pl.BlockSpec((Kp, N), lambda i: (0, 0)),
            ],
            out_specs=pl.BlockSpec((tm, N), lambda i: (i, 0)),
        ),
        compiler_params=pltpu.CompilerParams(
            # Rows are independent: shard the row grid across TensorCores.
            dimension_semantics=("parallel",),
            # Let XLA fuse the patch-extraction producer into the streamed
            # operand (avoids materializing the patches intermediate in HBM).
            allow_input_fusion=[True, False],
            vmem_limit_bytes=vmem_limit_bytes,
        ),
        cost_estimate=pl.CostEstimate(
            flops=2 * M * Kp * N,
            transcendentals=0,
            bytes_accessed=bytes_accessed,
        ),
    )(patches, w_mat)


# ------------------------------ Module wrapper --------------------------------
class PatchifyLinearPallas:
    """JAX/Pallas port of PatchifyLinear: stride-p, kernel-p Conv2d(3->latent_dim), no bias."""

    _MIN_GRID_STEPS = 8   # >= 3-4 pipelined steps per TensorCore on v7x megacore
    _TM_HARD_CAP = 8192   # ~12 MiB double-buffered at bf16-in / f32-out

    def __init__(self, patch_size: int = 5, latent_dim: int = 128, key=None,
                 compute_dtype=jnp.bfloat16, out_dtype=None):
        self.patch_size = patch_size
        self.latent_dim = latent_dim
        # bf16 streaming by default (MXU accumulation stays f32 in-kernel);
        # pass compute_dtype=jnp.float32 for bit-faithful numerics.
        self.compute_dtype = compute_dtype
        # None -> match input dtype (f32). Set jnp.bfloat16 if the consumer
        # tolerates it to also halve the output writeback bytes.
        self.out_dtype = out_dtype
        in_ch = 3
        if key is None:
            key = jax.random.PRNGKey(0)
        # Deterministic init; same shape as torch Conv2d weight (O, C, p, p).
        fan_in = in_ch * patch_size * patch_size
        bound = 1.0 / jnp.sqrt(fan_in)
        self.weight = jax.random.uniform(
            key, (latent_dim, in_ch, patch_size, patch_size),
            dtype=jnp.float32, minval=-bound, maxval=bound,
        )

    def _pick_tiling(self, m: int, kp: int, in_itemsize: int, out_itemsize: int,
                     vmem_limit: int):
        # Align row tiles to the sublane packing of the streamed dtype.
        align = 16 if in_itemsize < 4 else 8
        n = self.latent_dim
        # Double-buffered streamed-input + output bytes per row (weight tile is
        # tiny and ignored); keep tiles under ~half the requested VMEM limit.
        row_bytes = 2 * (kp * in_itemsize + n * out_itemsize)
        budget = max(vmem_limit // 2, 1 << 20)
        tm_cap = max(align, min(self._TM_HARD_CAP,
                                (budget // row_bytes) // align * align))
        # Enough grid steps for per-core pipelining; only pad M by < one tile.
        g = max(self._MIN_GRID_STEPS, pl.cdiv(m, tm_cap))
        tm = min(tm_cap, max(align, _round_up(pl.cdiv(m, g), align)))
        mp = _round_up(m, tm)
        return tm, mp

    def __call__(self, x):
        # x: (B, H, W, C) NHWC float32
        B, H, W, C = x.shape
        p = self.patch_size
        N = self.latent_dim
        assert H % p == 0 and W % p == 0 and C == 3, (H, W, C)
        nH, nW = H // p, W // p
        K = p * p * C
        M = B * nH * nW
        out_dtype = self.out_dtype if self.out_dtype is not None else x.dtype

        # Patch extraction: rows in (kh, kw, c) order. With allow_input_fusion
        # on the streamed operand, XLA can fold this chain into the kernel's
        # input instead of materializing an HBM intermediate.
        xp = x.reshape(B, nH, p, nW, p, C)
        xp = jnp.transpose(xp, (0, 1, 3, 2, 4, 5))          # (B, nH, nW, p, p, C)
        patches = xp.reshape(M, K)                           # (M, K)

        # Weight (O, C, p, p) -> (p, p, C, O) -> (K, N), matching the row order.
        w_mat = jnp.transpose(self.weight, (2, 3, 1, 0)).reshape(K, N)

        # Zero-pad K up to a lane-dense multiple of 128 (75 -> 128).
        Kp = _round_up(K, 128)
        if Kp != K:
            patches = jnp.pad(patches, ((0, 0), (0, Kp - K)))
            w_mat = jnp.pad(w_mat, ((0, Kp - K), (0, 0)))

        # bf16 (default) streaming; the kernel accumulates in f32 on the MXU.
        if patches.dtype != self.compute_dtype:
            patches = patches.astype(self.compute_dtype)
        if w_mat.dtype != self.compute_dtype:
            w_mat = w_mat.astype(self.compute_dtype)

        vmem_limit = _vmem_limit_bytes()
        tm, Mp = self._pick_tiling(
            M, Kp,
            jnp.dtype(self.compute_dtype).itemsize,
            jnp.dtype(out_dtype).itemsize,
            vmem_limit,
        )
        if Mp != M:
            patches = jnp.pad(patches, ((0, Mp - M), (0, 0)))

        out = _patch_matmul(patches, w_mat, tm=tm, out_dtype=out_dtype,
                            vmem_limit_bytes=vmem_limit)
        if Mp != M:
            out = out[:M]
        return out.reshape(B, nH, nW, N)                     # (B, H//p, W//p, latent_dim)


# ---------------------------------- main --------------------------------------
if __name__ == "__main__":
    patch_size = 5
    latent_dim = 128
    B, H, W, C = 2, 20, 20, 3     # H, W multiples of patch_size

    key = jax.random.PRNGKey(0)
    kx, kw = jax.random.split(key)
    x = jax.random.normal(kx, (B, H, W, C), dtype=jnp.float32)

    # Default fast path (bf16 streaming) and exact path (f32) share the weights.
    model_fast = PatchifyLinearPallas(patch_size, latent_dim, key=kw)
    model_exact = PatchifyLinearPallas(patch_size, latent_dim, key=kw,
                                       compute_dtype=jnp.float32)

    out_fast = jax.block_until_ready(jax.jit(model_fast.__call__)(x))
    out_exact = jax.block_until_ready(jax.jit(model_exact.__call__)(x))

    # Reference (pure JAX) check of the conv-as-matmul semantics.
    ref = jax.lax.conv_general_dilated(
        jnp.transpose(x, (0, 3, 1, 2)),                      # NCHW
        model_exact.weight,                                   # OIHW
        window_strides=(patch_size, patch_size),
        padding="VALID",
    )
    ref = jnp.transpose(ref, (0, 2, 3, 1))                    # NHWC-of-patches

    expected = (B, H // patch_size, W // patch_size, latent_dim)
    assert out_exact.shape == expected, out_exact.shape
    assert out_fast.shape == expected, out_fast.shape
    # f32 streaming path is numerically faithful to the torch module.
    assert jnp.allclose(out_exact, ref, atol=1e-4, rtol=1e-4), \
        float(jnp.max(jnp.abs(out_exact - ref)))
    # bf16-streamed path: inputs/weights rounded to bf16, so compare loosely.
    assert jnp.allclose(out_fast, ref, atol=8e-2, rtol=8e-2), \
        float(jnp.max(jnp.abs(out_fast - ref)))

    print("KERNEL_OK")
</pallas_src>

<mosaic_0001>
module attributes {stable_mosaic.version = 11 : i64} {
  func.func @_patchify_matmul_kernel(%arg0: i32, %arg1: memref<16x128xbf16, #tpu.memory_space<vmem>>, %arg2: memref<128x128xbf16, #tpu.memory_space<vmem>>, %arg3: memref<16x128xf32, #tpu.memory_space<vmem>>) attributes {dimension_semantics = [#tpu.dimension_semantics<parallel>], iteration_bounds = array<i64: 2>, scalar_prefetch = 0 : i64, scratch_operands = 0 : i64, tpu.core_type = #tpu.core_type<tc>, window_params = [{transform_indices = @transform_0, window_bounds = array<i64: 16, 128>}, {pipeline_mode = #tpu.pipeline_mode<synchronous>, transform_indices = @transform_1, window_bounds = array<i64: 128, 128>}, {transform_indices = @transform_2, window_bounds = array<i64: 16, 128>}]} {
    %c0 = arith.constant 0 : index
    %c0_0 = arith.constant 0 : index
    %0 = vector.load %arg1[%c0, %c0_0] : memref<16x128xbf16, #tpu.memory_space<vmem>>, vector<16x128xbf16>
    %c0_1 = arith.constant 0 : index
    %c0_2 = arith.constant 0 : index
    %1 = vector.load %arg2[%c0_1, %c0_2] : memref<128x128xbf16, #tpu.memory_space<vmem>>, vector<128x128xbf16>
    %cst = arith.constant dense<0.000000e+00> : vector<16x128xf32>
    %2 = tpu.matmul %0, %1, %cst {dimension_numbers = #tpu.dot_dimension_numbers<[1], [0], [0], [1], [0, 0, 1, 1], [], []>} : vector<16x128xbf16>, vector<128x128xbf16>, vector<16x128xf32> -> vector<16x128xf32>
    %c0_3 = arith.constant 0 : index
    %c0_4 = arith.constant 0 : index
    %3 = vector.load %arg3[%c0_3, %c0_4] : memref<16x128xf32, #tpu.memory_space<vmem>>, vector<16x128xf32>
    tpu.vector_store %arg3[%c0_3, %c0_4], %2 {strides = array<i32>} : memref<16x128xf32, #tpu.memory_space<vmem>>, vector<16x128xf32>,
    return
  }
  func.func @transform_0(%arg0: i32) -> (i32, i32) {
    %c0_i32 = arith.constant 0 : i32
    %c0_i32_0 = arith.constant 0 : i32
    return %arg0, %c0_i32 : i32, i32
  }
  func.func @transform_1(%arg0: i32) -> (i32, i32) {
    %c0_i32 = arith.constant 0 : i32
    %c0_i32_0 = arith.constant 0 : i32
    %c0_i32_1 = arith.constant 0 : i32
    return %c0_i32, %c0_i32_0 : i32, i32
  }
  func.func @transform_2(%arg0: i32) -> (i32, i32) {
    %c0_i32 = arith.constant 0 : i32
    %c0_i32_0 = arith.constant 0 : i32
    return %arg0, %c0_i32 : i32, i32
  }
}

</mosaic_0001>

<bundles_post_ra>
// kernel: a_call__.2
= control target key start
LH: loop header
LB: loop body
LE: loop exit
PB: predicated region body
PF: predicated region fallthrough
CT: control target
= control target key end

     0   :  { %s710_s0 = inlined_call_operand.vmem [shape: bf16[128,128], index: 0, kind: input, shape index: {}]   ;;  %s711_s1 = inlined_call_operand.vmem [shape: bf16[32,75], index: 1, kind: input, shape index: {}]   ;;  %s712_s2 = inlined_call_operand.<no memory space> [shape: bf16[], index: 2, kind: input, shape index: {}]   ;;  %s713_s3 = inlined_call_operand.hbm [shape: f32[32,128], index: 3, kind: output, shape index: {}]  }
   0x1   :  { %v8_v0 = vstv %s712_s2 }
   0x2   :  { %v581_v1 = vunpack.i.l.bf16 %v8_v0 }
   0x3   :  { %13 = vsyncpa [#allocation8], 0 }
   0x4   :  { %15 = vsyncpa [#allocation8 + $0x1], 0  ;;  %s583_s14 = smov 0   ;;  %s585_s15 = smov 0  }
   0x5   :  { %s587_s16 = smov 0   ;;  %s589_s17 = smov 0  }
   0x6 LB: > { %s604_s2 = sadd.s32 4294967295, %s551_s17   ;;  %s387_s18 = sadd.s32 4294967294, %s551_s17   ;;  %s551_s17 = sphi %s589_s17, %s719_s17   ;;  %s547_s16 = sphi %s587_s16, %s718_s16   ;;  %s543_s15 = sphi %s585_s15, %s717_s15   ;;  %s539_s14 = sphi %s583_s14, %s716_s14  }
   0x7   : > { %s608_s19 = sadd.s32 1, %s551_s17   ;;  %s75_s20 = sadd.s32 1, %s547_s16 }
   0x8   : > { %s72_s21 = ssub.s32 %s551_s17, %s608_s19  ;;  %p85_p0 = scmp.ne.s32.totalorder %s547_s16, %s543_s15 }
   0x9   : > { %p73_p1 = scmp.eq.s32.totalorder %s72_s21, 0  ;;  %p86_p2 = scmp.eq.s32.totalorder %s604_s2, 1 }
   0xa   : > { %p91_p3 = scmp.ne.s32.totalorder %s543_s15, %s539_s14  ;;  %p92_p4 = scmp.eq.s32.totalorder %s387_s18, 1 }
   0xb   : > { %s619_s22 = scalar_select %p73_p1, %s547_s16, %s75_s20  }
   0xc   : > { %p621_p5 = por %p86_p2, %p85_p0  ;;  %p625_p6 = por %p92_p4, %p91_p3 }
   0xd   : > { %p390_p7 = scmp.ge.s32.totalorder %s551_s17, 1  ;;  %p122_p8 = scmp.lt.s32.totalorder %s551_s17, 3 }
   0xf   : > { %p123_p9 = pnand %p390_p7, %p122_p8 }
  0x11   : > { %126 = sbr.rel (%p123_p9) target bundleno = 267 (0x10b), region = 28 }
  0x16   : > { %v482_v2 = vld [vmem:[%s710_s0 + $0x38] sm:$0xff]   ;;  %v553_v3 = vmov 0.0   ;;  %v163_v4 = vlaneseq  ;;  %v483_v5 = vld [vmem:[%s710_s0 + $0x30] sm:$0xff]   ;;  %vm554_vm0 = vmmov 0   ;;  %s392_s29 = sshll.u32 %s604_s2, 1  ;;  %v484_v7 = vld [vmem:[%s710_s0 + $0x28] sm:$0xff]  }
  0x17   : > { %419 = vmatprep.subr.bf16.mxu0 %v553_v3  ;;  %435 = vmatprep.mubr.msk.bf16.mxu0 %vm554_vm0, %v553_v3  ;;  %p145_p10 = scmp.lt.s32.totalorder %s392_s29, 3  ;;  %v485_v9 = vld [vmem:[%s710_s0 + $0x20] sm:$0xff]   ;;  %v486_v16 = vld [vmem:[%s710_s0 + $0x18] sm:$0xff]   ;;  %v487_v17 = vld [vmem:[%s710_s0 + $0x10] sm:$0xff]   ;;  %s141_s27 = sand.u32 1, %s543_s15  }
  0x18   : > { %420 = vmatpush3.bf16.msra.mxu0 %v482_v2  ;;  %v164_v6 = vand.u32 127, %v163_v4  ;;  %v488_v18 = vld [vmem:[%s710_s0 + $0x8] sm:$0xff]   ;;  %v489_v19 = vld [vmem:[%s710_s0] sm:$0xff]   ;;  %s391_s28 = sshll.u32 %s141_s27, 4  ;;  %s409_s4 = sshll.u32 %s604_s2, 8 }
  0x19   : > { %421 = vmatprep.subr.bf16.mxu0 %v553_v3  ;;  %s721_s29 = smov (!%p145_p10, %s392_s29), 3  ;;  %s668_s7 = scalar_lea.hbm %s713_s3, %s409_s4 }
  0x1a   : > { %s393_s5 = sshll.u32 %s721_s29, 2  ;;  %vm166_vm1 = vcmp.lt.s32.totalorder %v164_v6, 75  ;;  %s143_s29 = scalar_lea.vmem [#allocation7], %s391_s28 }
  0x1b   : > { %s148_s8 = scalar_lea.vmem %s711_s1, %s393_s5  ;;  %s325_s30 = sshll.u32 %s143_s29, 4  ;;  %s663_s30 = int_to_ptr.vmem [resolvable:$true] %s325_s30 }
  0x1c   : > { %422 = vmatpush3.bf16.msra.mxu0 %v483_v5  ;;  %v160_v8 = vld [vmem:[%s148_s8] sm:$0xff]   ;;  %s670_s8 = scalar_lea.sflag [#allocation8], %s141_s27  ;;  %s491_s9 = scalar_lea.vmem %s663_s30, 256 }
  0x1d   : > { %423 = vmatprep.subr.bf16.mxu0 %v553_v3  ;;  %v161_v10 = vunpack.c.l.bf16 %v160_v8  ;;  %v183_v11 = vunpack.c.h.bf16 %v160_v8  ;;  %p492_p11 = scmp.ne.s32.totalorder %s663_s30, %s491_s9  ;;  %s555_s2 = smov [#allocation7]  }
  0x1e   : > { %s495_s10 = sshll.u32 %s555_s2, 4  ;;  %s496_s10 = int_to_ptr.vmem [resolvable:$false] %s495_s10 }
  0x1f   : > { %v167_v12 = vsel %vm166_vm1, %v161_v10, %v581_v1  ;;  %v189_v13 = vsel %vm166_vm1, %v183_v11, %v581_v1  ;;  %p493_p12 = pnand %p492_p11, %p621_p5  ;;  %s497_s11 = scalar_lea.vmem %s496_s10, 512 }
  0x20   : > { %424 = vmatpush3.bf16.msra.mxu0 %v484_v7  ;;  %v168_v14 = vpack.c.bf16 %v553_v3, %v167_v12  ;;  %v191_v15 = vpack.c.bf16 %v553_v3, %v189_v13  ;;  %p498_p0 = scmp.lt.s32.totalorder %s663_s30, %s496_s10  ;;  %p499_p1 = scmp.lt.s32.totalorder %s497_s11, %s491_s9 }
  0x21   : > { %425 = vmatprep.subr.bf16.mxu0 %v553_v3  ;;  %p494_p13 = pneg %p493_p12 }
  0x22   : > { %171 = vst [vmem:[#allocation9] sm:$0xf] %v168_v14  ;;  %194 = vst [vmem:[#allocation9 + $0x4] sm:$0xf] %v191_v15  ;;  %p500_p2 = por %p499_p1, %p498_p0 }
  0x24   : > { %426 = vmatpush3.bf16.msra.mxu0 %v485_v9  ;;  %p501_p3 = pnand %p500_p2, %p494_p13 }
  0x25   : > { %427 = vmatprep.subr.bf16.mxu0 %v553_v3 }
  0x28   : > { %428 = vmatpush3.bf16.msra.mxu0 %v486_v16 }
  0x29   : > { %429 = vmatprep.subr.bf16.mxu0 %v553_v3  ;;  %v490_v20 = vld [vmem:[#allocation9] sm:$0xff]  }
  0x2c   : > { %430 = vmatpush3.bf16.msra.mxu0 %v487_v17 }
  0x2d   : > { %431 = vmatprep.subr.bf16.mxu0 %v553_v3 }
  0x30   : > { %432 = vmatpush3.bf16.msra.mxu0 %v488_v18 }
  0x31   : > { %433 = vmatprep.subr.bf16.mxu0 %v553_v3 }
  0x34   : > { %434 = vmatpush3.bf16.msra.mxu0 %v489_v19 }
  0x37   : > { %436 = vmatmul.mubr.bf16.vlgmr.msra.gmra.mxu0 %v490_v20 }
  0xf7   : > { %v302_v21 = vpop.f32.mrf.mxu0 }
  0xf8   : > { %309 = vst [vmem:[%s143_s29] sm:$0xff] %v302_v21 }
  0xf9   : > { %v437_v22 = vpop.f32.mrf.mxu0 }
  0xfb   : > { %v305_v23 = vpop.f32.mrf.mxu0 }
  0xfc   : > { %310 = vst [vmem:[%s143_s29 + $0x8] sm:$0xff] %v305_v23 }
  0xfd   : > { %v438_v24 = vpop.f32.mrf.mxu0 }
  0xfe   : > { %504 = shalt.err (!%p501_p3)
}
  0xff   : > { %s505_s12 = scalar_lea.hbm %s668_s7, 256  ;;  %s509_s20 = scalar_lea.hbm %s713_s3, 512 }
 0x100   : > { %p506_p4 = scmp.ne.s32.totalorder %s668_s7, %s505_s12  ;;  %p510_p9 = scmp.lt.s32.totalorder %s668_s7, %s713_s3 }
 0x101   : > { %p511_p10 = scmp.lt.s32.totalorder %s509_s20, %s505_s12 }
 0x102   : > { %p507_p7 = pnand %p506_p4, %p621_p5 }
 0x103   : > { %p512_p11 = por %p511_p10, %p510_p9 }
 0x104   : > { %p508_p8 = pneg %p507_p7 }
 0x106   : > { %p513_p12 = pnand %p512_p11, %p508_p8 }
 0x108   : > { %516 = shalt.err (!%p513_p12)
}
 0x109   : > { %s556_s26 = smov 128   ;;  %s557_s27 = smov 8  }
 0x10a   : > { %439 = dma.vmem_to_hbm [thread:$0]  (%p621_p5), %s663_s30, 256, %s668_s7, %s670_s8, %s556_s26, %s556_s26, %s557_s27  }
 0x10b PF: > { %p445_p13 = scmp.ge.s32.totalorder %s551_s17, 2  ;;  %s340_s28 = sand.u32 1, %s539_s14  }
 0x10c   : > { %s341_s29 = scalar_lea.sflag [#allocation8], %s340_s28 }
 0x10d   : > { %p442_p0 = pnand %p445_p13, %p625_p6 }
 0x10f   : > { %p443_p1 = pneg %p442_p0 }
 0x111   : > { %534 = dma.done.wait (%p443_p1), %s341_s29, 256  }
 0x112   : > { %536 = vsyncadd (%p443_p1), %s341_s29, 4294967040  ;;  %p18_p2 = scmp.ge.s32.totalorder %s608_s19, 4   ;;  %s716_s14 = smov %s543_s15 }
 0x113   : > { %s717_s15 = smov %s547_s16  ;;  %s718_s16 = smov %s619_s22 }
 0x114   : > { %s719_s17 = smov %s608_s19  ;;  %20 = sbr.rel (!%p18_p2) target bundleno = 6 (0x6), region = 65 }
 0x119   :  { %346 = vsyncpa [#allocation8], 1 }
 0x11a   :  { %348 = vsyncpa [#allocation8 + $0x1], 1 }

</bundles_post_ra>
